<compile_context>
chip_gen: v7x
topology: tpu7x:2x2x1
jax: 0.10.0
libtpu: 0.0.40
codegen_flags: <defaults>
</compile_context>

<pallas_src>
import functools
import math

import jax
import jax.numpy as jnp
from jax.experimental import pallas as pl
from jax.experimental.pallas import tpu as pltpu


# Safe on v5e (128 MiB phys), v6e (128 MiB) and v7x (64 MiB) and >= defaults
# everywhere it matters; per-step working sets here are well under this.
_VMEM_LIMIT = 32 * 1024 * 1024


def _compiler_params(semantics):
    return pltpu.CompilerParams(dimension_semantics=semantics,
                                vmem_limit_bytes=_VMEM_LIMIT)


# ----------------------------------------------------------------------------
# Fused conv + BN(+residual)(+ReLU) kernel  (one output row per grid step)
# ----------------------------------------------------------------------------

def _conv_row_kernel(*refs, plan, n_rows, relu, has_res, wo):
    row_refs = refs[:n_rows]
    w_ref = refs[n_rows]                  # (kh, kw, cin, cout) bf16
    b_ref = refs[n_rows + 1]              # (1, cout) f32
    res_ref = refs[n_rows + 2] if has_res else None
    o_ref = refs[-1]
    cout = o_ref.shape[-1]

    acc = jnp.zeros((wo, cout), jnp.float32)
    for (dh, dw, ref_i, col0) in plan:
        xr = row_refs[ref_i][0, 0, pl.ds(col0, wo), :]      # (wo, cin) bf16
        wt = w_ref[dh, dw]                                   # (cin, cout) bf16
        acc = acc + jnp.dot(xr, wt, preferred_element_type=jnp.float32)
    acc = acc + b_ref[...]
    if has_res:
        acc = acc + res_ref[0, 0].astype(jnp.float32)
    if relu:
        acc = jnp.maximum(acc, 0.0)
    o_ref[0, 0] = acc.astype(o_ref.dtype)


def conv_bn(x, w, bias, stride=1, relu=True, residual=None):
    """NHWC conv (kernel inferred from w=(kh,kw,Cin,Cout), padding=kh//2,
    BN scale pre-folded into w) + fused bias / residual-add / ReLU."""
    N, H, W, Cin = x.shape
    kh, kw, wcin, Cout = w.shape
    assert wcin == Cin and stride in (1, 2)
    ph, pw = kh // 2, kw // 2
    Ho = (H + 2 * ph - kh) // stride + 1
    Wo = (W + 2 * pw - kw) // stride + 1

    # Pad tiny contraction dims (first conv has Cin=3) up to 8 for the MXU.
    if Cin < 8:
        x = jnp.pad(x, ((0, 0), (0, 0), (0, 0), (0, 8 - Cin)))
        w = jnp.pad(w, ((0, 0), (0, 0), (0, 8 - Cin), (0, 0)))
        Cin = 8

    xp = x
    if ph or pw:
        xp = jnp.pad(xp, ((0, 0), (ph, ph), (pw, pw), (0, 0)))
    xp = xp.astype(jnp.bfloat16)

    # Column plan: tap dw -> (plane index, start column within that plane).
    if stride == 1:
        col_plan = {dw: (0, dw) for dw in range(kw)}
        plane_arrays = {0: xp}
    else:  # stride 2: split into even/odd column planes so taps are contiguous
        col_plan = {dw: (dw % 2, dw // 2) for dw in range(kw)}
        plane_arrays = {p: xp[:, :, p::2, :]
                        for p in sorted({v[0] for v in col_plan.values()})}

    # One row-ref per (plane, dh) pair actually used.
    pairs = sorted({(col_plan[dw][0], dh)
                    for dh in range(kh) for dw in range(kw)})
    pair_to_ref = {pr: i for i, pr in enumerate(pairs)}
    plan = []
    for dh in range(kh):
        for dw in range(kw):
            p_idx, col0 = col_plan[dw]
            assert col0 + Wo <= plane_arrays[p_idx].shape[2]
            plan.append((dh, dw, pair_to_ref[(p_idx, dh)], col0))
    plan = tuple(plan)

    row_inputs, row_specs = [], []
    for (p_idx, dh) in pairs:
        arr = plane_arrays[p_idx]
        row_inputs.append(arr)
        row_specs.append(pl.BlockSpec(
            (1, 1, arr.shape[2], Cin),
            lambda n, ho, dh=dh: (n, ho * stride + dh, 0, 0)))

    w_bf = w.astype(jnp.bfloat16)
    b2 = bias.reshape(1, Cout).astype(jnp.float32)

    inputs = row_inputs + [w_bf, b2]
    in_specs = row_specs + [
        pl.BlockSpec((kh, kw, Cin, Cout), lambda n, ho: (0, 0, 0, 0)),
        pl.BlockSpec((1, Cout), lambda n, ho: (0, 0)),
    ]
    has_res = residual is not None
    if has_res:
        assert residual.shape == (N, Ho, Wo, Cout)
        inputs.append(residual.astype(jnp.bfloat16))
        in_specs.append(pl.BlockSpec((1, 1, Wo, Cout),
                                     lambda n, ho: (n, ho, 0, 0)))

    out = pl.pallas_call(
        functools.partial(_conv_row_kernel, plan=plan, n_rows=len(pairs),
                          relu=relu, has_res=has_res, wo=Wo),
        out_shape=jax.ShapeDtypeStruct((N, Ho, Wo, Cout), jnp.bfloat16),
        grid=(N, Ho),
        in_specs=in_specs,
        out_specs=pl.BlockSpec((1, 1, Wo, Cout), lambda n, ho: (n, ho, 0, 0)),
        compiler_params=_compiler_params(("parallel", "parallel")),
    )(*inputs)
    return out


# ----------------------------------------------------------------------------
# MaxPool2d(kernel=3, stride=2, padding=0)  (same row-block structure)
# ----------------------------------------------------------------------------

def _maxpool_kernel(*refs, plan, n_rows, wo):
    row_refs = refs[:n_rows]
    o_ref = refs[-1]
    res = None
    for (ref_i, col0) in plan:
        v = row_refs[ref_i][0, 0, pl.ds(col0, wo), :]
        res = v if res is None else jnp.maximum(res, v)
    o_ref[0, 0] = res


def maxpool3x3_s2(x):
    N, H, W, C = x.shape
    Ho = (H - 3) // 2 + 1
    Wo = (W - 3) // 2 + 1
    planes = [x[:, :, 0::2, :], x[:, :, 1::2, :]]     # even / odd columns
    pairs = [(p, dh) for dh in range(3) for p in range(2)]
    pair_to_ref = {pr: i for i, pr in enumerate(pairs)}
    plan = []
    for dh in range(3):
        for dw in range(3):
            p, col0 = dw % 2, dw // 2
            assert col0 + Wo <= planes[p].shape[2]
            plan.append((pair_to_ref[(p, dh)], col0))

    row_inputs = [planes[p] for (p, dh) in pairs]
    row_specs = [pl.BlockSpec((1, 1, planes[p].shape[2], C),
                              lambda n, ho, dh=dh: (n, 2 * ho + dh, 0, 0))
                 for (p, dh) in pairs]
    out = pl.pallas_call(
        functools.partial(_maxpool_kernel, plan=tuple(plan),
                          n_rows=len(pairs), wo=Wo),
        out_shape=jax.ShapeDtypeStruct((N, Ho, Wo, C), x.dtype),
        grid=(N, Ho),
        in_specs=row_specs,
        out_specs=pl.BlockSpec((1, 1, Wo, C), lambda n, ho: (n, ho, 0, 0)),
        compiler_params=_compiler_params(("parallel", "parallel")),
    )(*row_inputs)
    return out


# ----------------------------------------------------------------------------
# Bilinear upsampling (align_corners=False), fused row-gather + width matmul
# ----------------------------------------------------------------------------

def _interp_matrix(out_size, in_size):
    """1-D bilinear interpolation matrix, PyTorch align_corners=False."""
    d = jnp.arange(out_size, dtype=jnp.float32)
    scale = in_size / out_size
    src = jnp.maximum((d + 0.5) * scale - 0.5, 0.0)
    i0 = jnp.minimum(jnp.floor(src).astype(jnp.int32), in_size - 1)
    i1 = jnp.minimum(i0 + 1, in_size - 1)
    lam = jnp.clip(src - i0.astype(jnp.float32), 0.0, 1.0)
    rows = jnp.arange(out_size)
    A = jnp.zeros((out_size, in_size), jnp.float32)
    A = A.at[rows, i0].add(1.0 - lam)
    A = A.at[rows, i1].add(lam)
    return A


def _upsample_kernel(x0_ref, x1_ref, aw_ref, o_ref, *, h_in, oh, den):
    j = pl.program_id(1)
    num = (2 * j + 1) * h_in - oh                 # src = num / den (clamped)
    numc = jnp.maximum(num, 0)
    i0 = jnp.minimum(numc // den, h_in - 1)
    lam = (numc - i0 * den).astype(jnp.float32) * (1.0 / den)
    x0 = x0_ref[0, 0].astype(jnp.float32)         # (w_pad, C)
    x1 = x1_ref[0, 0].astype(jnp.float32)
    r = x0 + lam * (x1 - x0)                      # H-direction lerp
    o_ref[0, 0] = jnp.dot(aw_ref[...], r,
                          preferred_element_type=jnp.float32
                          ).astype(o_ref.dtype)


def bilinear_upsample(x, out_h, out_w):
    """F.interpolate(mode='bilinear', align_corners=False) to (out_h, out_w)."""
    N, H, W, C = x.shape
    w_pad = max(W, 8)
    aw = _interp_matrix(out_w, W)                 # (out_w, W)
    if w_pad != W:                                # keep MXU contraction >= 8
        x = jnp.pad(x, ((0, 0), (0, 0), (0, w_pad - W), (0, 0)))
        aw = jnp.pad(aw, ((0, 0), (0, w_pad - W)))
    x = x.astype(jnp.bfloat16)
    den = 2 * out_h

    def src_map(offset):
        def idx(n, j):
            num = (2 * j + 1) * H - out_h
            numc = jnp.maximum(num, 0)
            return (n, jnp.minimum(numc // den + offset, H - 1), 0, 0)
        return idx

    out = pl.pallas_call(
        functools.partial(_upsample_kernel, h_in=H, oh=out_h, den=den),
        out_shape=jax.ShapeDtypeStruct((N, out_h, out_w, C), jnp.float32),
        grid=(N, out_h),
        in_specs=[
            pl.BlockSpec((1, 1, w_pad, C), src_map(0)),
            pl.BlockSpec((1, 1, w_pad, C), src_map(1)),
            pl.BlockSpec((out_w, w_pad), lambda n, j: (0, 0)),
        ],
        out_specs=pl.BlockSpec((1, 1, out_w, C), lambda n, j: (n, j, 0, 0)),
        compiler_params=_compiler_params(("parallel", "arbitrary")),
    )(x, x, aw)
    return out


# ----------------------------------------------------------------------------
# Parameters (deterministic init mirroring the PyTorch __init__, BN folded)
# ----------------------------------------------------------------------------

def _kaiming_conv(key, kh, kw, cin, cout):
    std = math.sqrt(2.0 / (cout * kh * kw))       # fan_out, relu
    return jax.random.normal(key, (kh, kw, cin, cout), jnp.float32) * std


def _fold_bn(w, cout, eps=1e-5):
    gamma = jnp.ones((cout,), jnp.float32)
    beta = jnp.zeros((cout,), jnp.float32)
    mean = jnp.zeros((cout,), jnp.float32)
    var = jnp.ones((cout,), jnp.float32)
    scale = gamma / jnp.sqrt(var + eps)
    return w * scale, beta - mean * scale


def make_params(key):
    keys = iter(jax.random.split(key, 64))

    def conv(kh, kw, cin, cout):
        return _fold_bn(_kaiming_conv(next(keys), kh, kw, cin, cout), cout)

    def block(cin, cout, stride, downsample):
        p = {'stride': stride}
        p['conv1_w'], p['conv1_b'] = conv(3, 3, cin, cout)
        p['conv2_w'], p['conv2_b'] = conv(3, 3, cout, cout)
        if downsample:
            p['ds_w'], p['ds_b'] = conv(1, 1, cin, cout)
        return p

    params = {'layer0': {}}
    l0 = params['layer0']
    l0['c0_w'], l0['c0_b'] = conv(3, 3, 3, 64)
    l0['c1_w'], l0['c1_b'] = conv(3, 3, 64, 64)
    l0['c2_w'], l0['c2_b'] = conv(3, 3, 64, 128)
    params['layer1'] = [block(128, 64, 1, True), block(64, 64, 1, False)]
    params['layer2'] = [block(64, 128, 2, True), block(128, 128, 1, False)]
    params['layer3'] = [block(128, 256, 2, True), block(256, 256, 1, False)]
    params['layer4'] = [block(256, 512, 2, True), block(512, 512, 1, False)]
    return params


# ----------------------------------------------------------------------------
# Forward pass (CityscapesResNet18Pyramid.forward)
# ----------------------------------------------------------------------------

def basic_block(x, p):
    out = conv_bn(x, p['conv1_w'], p['conv1_b'], stride=p['stride'], relu=True)
    if 'ds_w' in p:
        residual = conv_bn(x, p['ds_w'], p['ds_b'], stride=p['stride'],
                           relu=False)
    else:
        residual = x
    # Second conv with fused BN + residual add + ReLU epilogue.
    return conv_bn(out, p['conv2_w'], p['conv2_b'], stride=1, relu=True,
                   residual=residual)


def cityscapes_resnet18_pyramid_forward(x_nchw, params):
    """Input NCHW (N,3,H,W) -> output NCHW (N, 1088, H, W)."""
    x = jnp.transpose(x_nchw, (0, 2, 3, 1)).astype(jnp.float32)   # NHWC
    N, H, W, _ = x.shape

    conv_scale_factor = 4 * 1 * 2 * 2 * 2            # 32
    scale_factor = conv_scale_factor                  # scale_factor=-1 in init
    out_h = int(H * scale_factor / conv_scale_factor)
    out_w = int(W * scale_factor / conv_scale_factor)

    pyramid = []

    # layer0
    p0 = params['layer0']
    x = conv_bn(x, p0['c0_w'], p0['c0_b'], stride=2, relu=True)
    x = conv_bn(x, p0['c1_w'], p0['c1_b'], stride=1, relu=True)
    x = conv_bn(x, p0['c2_w'], p0['c2_b'], stride=1, relu=True)
    x = maxpool3x3_s2(x)
    pyramid.append(bilinear_upsample(x, out_h, out_w))

    # layer1 .. layer4
    for name in ('layer1', 'layer2', 'layer3', 'layer4'):
        for bp in params[name]:
            x = basic_block(x, bp)
        pyramid.append(bilinear_upsample(x, out_h, out_w))

    out = jnp.concatenate(pyramid, axis=-1)           # C = 128+64+128+256+512
    return jnp.transpose(out, (0, 3, 1, 2))           # back to NCHW


# ----------------------------------------------------------------------------
# Main
# ----------------------------------------------------------------------------

if __name__ == "__main__":
    key = jax.random.PRNGKey(0)
    k_x, k_p = jax.random.split(key)

    x = jax.random.normal(k_x, (2, 3, 32, 32), jnp.float32)   # small NCHW input
    params = make_params(k_p)

    out = cityscapes_resnet18_pyramid_forward(x, params)
    out = jax.block_until_ready(out)

    assert out.shape == (2, 1088, 32, 32), out.shape
    assert bool(jnp.all(jnp.isfinite(out)))
    print("KERNEL_OK")
</pallas_src>

<mosaic_0001>
module attributes {stable_mosaic.version = 11 : i64} {
  func.func @_conv_row_kernel(%arg0: i32, %arg1: i32, %arg2: memref<1x1x17x8xbf16, #tpu.memory_space<vmem>>, %arg3: memref<1x1x17x8xbf16, #tpu.memory_space<vmem>>, %arg4: memref<1x1x17x8xbf16, #tpu.memory_space<vmem>>, %arg5: memref<1x1x17x8xbf16, #tpu.memory_space<vmem>>, %arg6: memref<1x1x17x8xbf16, #tpu.memory_space<vmem>>, %arg7: memref<1x1x17x8xbf16, #tpu.memory_space<vmem>>, %arg8: memref<3x3x8x64xbf16, #tpu.memory_space<vmem>>, %arg9: memref<1x64xf32, #tpu.memory_space<vmem>>, %arg10: memref<1x1x16x64xbf16, #tpu.memory_space<vmem>>) attributes {dimension_semantics = [#tpu.dimension_semantics<parallel>, #tpu.dimension_semantics<parallel>], iteration_bounds = array<i64: 2, 16>, scalar_prefetch = 0 : i64, scratch_operands = 0 : i64, tpu.core_type = #tpu.core_type<tc>, window_params = [{transform_indices = @transform_0, window_bounds = array<i64: 1, 1, 17, 8>}, {transform_indices = @transform_1, window_bounds = array<i64: 1, 1, 17, 8>}, {transform_indices = @transform_2, window_bounds = array<i64: 1, 1, 17, 8>}, {transform_indices = @transform_3, window_bounds = array<i64: 1, 1, 17, 8>}, {transform_indices = @transform_4, window_bounds = array<i64: 1, 1, 17, 8>}, {transform_indices = @transform_5, window_bounds = array<i64: 1, 1, 17, 8>}, {pipeline_mode = #tpu.pipeline_mode<synchronous>, transform_indices = @transform_6, window_bounds = array<i64: 3, 3, 8, 64>}, {pipeline_mode = #tpu.pipeline_mode<synchronous>, transform_indices = @transform_7, window_bounds = array<i64: 1, 64>}, {transform_indices = @transform_8, window_bounds = array<i64: 1, 1, 16, 64>}]} {
    %cst = arith.constant 0.000000e+00 : f32
    %0 = vector.broadcast %cst : f32 to vector<16x64xf32>
    %c0 = arith.constant 0 : index
    %c0_0 = arith.constant 0 : index
    %c0_1 = arith.constant 0 : index
    %c0_2 = arith.constant 0 : index
    %1 = vector.load %arg2[%c0, %c0_0, %c0_1, %c0_2] : memref<1x1x17x8xbf16, #tpu.memory_space<vmem>>, vector<1x1x16x8xbf16>
    %2 = vector.shape_cast %1 : vector<1x1x16x8xbf16> to vector<16x8xbf16>
    %c0_3 = arith.constant 0 : index
    %c0_4 = arith.constant 0 : index
    %c0_5 = arith.constant 0 : index
    %c0_6 = arith.constant 0 : index
    %3 = vector.load %arg8[%c0_3, %c0_4, %c0_5, %c0_6] : memref<3x3x8x64xbf16, #tpu.memory_space<vmem>>, vector<1x1x8x64xbf16>
    %4 = vector.shape_cast %3 : vector<1x1x8x64xbf16> to vector<8x64xbf16>
    %cst_7 = arith.constant dense<0.000000e+00> : vector<16x64xf32>
    %5 = tpu.matmul %2, %4, %cst_7 {dimension_numbers = #tpu.dot_dimension_numbers<[1], [0], [0], [1], [0, 0, 1, 1], [], []>} : vector<16x8xbf16>, vector<8x64xbf16>, vector<16x64xf32> -> vector<16x64xf32>
    %6 = arith.addf %0, %5 : vector<16x64xf32>
    %c0_8 = arith.constant 0 : index
    %c0_9 = arith.constant 0 : index
    %c0_10 = arith.constant 0 : index
    %c0_11 = arith.constant 0 : index
    %7 = vector.load %arg5[%c0_8, %c0_9, %c0_10, %c0_11] : memref<1x1x17x8xbf16, #tpu.memory_space<vmem>>, vector<1x1x16x8xbf16>
    %8 = vector.shape_cast %7 : vector<1x1x16x8xbf16> to vector<16x8xbf16>
    %c0_12 = arith.constant 0 : index
    %c1 = arith.constant 1 : index
    %c0_13 = arith.constant 0 : index
    %c0_14 = arith.constant 0 : index
    %9 = vector.load %arg8[%c0_12, %c1, %c0_13, %c0_14] : memref<3x3x8x64xbf16, #tpu.memory_space<vmem>>, vector<1x1x8x64xbf16>
    %10 = vector.shape_cast %9 : vector<1x1x8x64xbf16> to vector<8x64xbf16>
    %cst_15 = arith.constant dense<0.000000e+00> : vector<16x64xf32>
    %11 = tpu.matmul %8, %10, %cst_15 {dimension_numbers = #tpu.dot_dimension_numbers<[1], [0], [0], [1], [0, 0, 1, 1], [], []>} : vector<16x8xbf16>, vector<8x64xbf16>, vector<16x64xf32> -> vector<16x64xf32>
    %12 = arith.addf %6, %11 : vector<16x64xf32>
    %c0_16 = arith.constant 0 : index
    %c0_17 = arith.constant 0 : index
    %c1_18 = arith.constant 1 : index
    %c0_19 = arith.constant 0 : index
    %13 = vector.load %arg2[%c0_16, %c0_17, %c1_18, %c0_19] : memref<1x1x17x8xbf16, #tpu.memory_space<vmem>>, vector<1x1x16x8xbf16>
    %14 = vector.shape_cast %13 : vector<1x1x16x8xbf16> to vector<16x8xbf16>
    %c0_20 = arith.constant 0 : index
    %c2 = arith.constant 2 : index
    %c0_21 = arith.constant 0 : index
    %c0_22 = arith.constant 0 : index
    %15 = vector.load %arg8[%c0_20, %c2, %c0_21, %c0_22] : memref<3x3x8x64xbf16, #tpu.memory_space<vmem>>, vector<1x1x8x64xbf16>
    %16 = vector.shape_cast %15 : vector<1x1x8x64xbf16> to vector<8x64xbf16>
    %cst_23 = arith.constant dense<0.000000e+00> : vector<16x64xf32>
    %17 = tpu.matmul %14, %16, %cst_23 {dimension_numbers = #tpu.dot_dimension_numbers<[1], [0], [0], [1], [0, 0, 1, 1], [], []>} : vector<16x8xbf16>, vector<8x64xbf16>, vector<16x64xf32> -> vector<16x64xf32>
    %18 = arith.addf %12, %17 : vector<16x64xf32>
    %c0_24 = arith.constant 0 : index
    %c0_25 = arith.constant 0 : index
    %c0_26 = arith.constant 0 : index
    %c0_27 = arith.constant 0 : index
    %19 = vector.load %arg3[%c0_24, %c0_25, %c0_26, %c0_27] : memref<1x1x17x8xbf16, #tpu.memory_space<vmem>>, vector<1x1x16x8xbf16>
    %20 = vector.shape_cast %19 : vector<1x1x16x8xbf16> to vector<16x8xbf16>
    %c1_28 = arith.constant 1 : index
    %c0_29 = arith.constant 0 : index
    %c0_30 = arith.constant 0 : index
    %c0_31 = arith.constant 0 : index
    %21 = vector.load %arg8[%c1_28, %c0_29, %c0_30, %c0_31] : memref<3x3x8x64xbf16, #tpu.memory_space<vmem>>, vector<1x1x8x64xbf16>
    %22 = vector.shape_cast %21 : vector<1x1x8x64xbf16> to vector<8x64xbf16>
    %cst_32 = arith.constant dense<0.000000e+00> : vector<16x64xf32>
    %23 = tpu.matmul %20, %22, %cst_32 {dimension_numbers = #tpu.dot_dimension_numbers<[1], [0], [0], [1], [0, 0, 1, 1], [], []>} : vector<16x8xbf16>, vector<8x64xbf16>, vector<16x64xf32> -> vector<16x64xf32>
    %24 = arith.addf %18, %23 : vector<16x64xf32>
    %c0_33 = arith.constant 0 : index
    %c0_34 = arith.constant 0 : index
    %c0_35 = arith.constant 0 : index
    %c0_36 = arith.constant 0 : index
    %25 = vector.load %arg6[%c0_33, %c0_34, %c0_35, %c0_36] : memref<1x1x17x8xbf16, #tpu.memory_space<vmem>>, vector<1x1x16x8xbf16>
    %26 = vector.shape_cast %25 : vector<1x1x16x8xbf16> to vector<16x8xbf16>
    %c1_37 = arith.constant 1 : index
    %c1_38 = arith.constant 1 : index
    %c0_39 = arith.constant 0 : index
    %c0_40 = arith.constant 0 : index
    %27 = vector.load %arg8[%c1_37, %c1_38, %c0_39, %c0_40] : memref<3x3x8x64xbf16, #tpu.memory_space<vmem>>, vector<1x1x8x64xbf16>
    %28 = vector.shape_cast %27 : vector<1x1x8x64xbf16> to vector<8x64xbf16>
    %cst_41 = arith.constant dense<0.000000e+00> : vector<16x64xf32>
    %29 = tpu.matmul %26, %28, %cst_41 {dimension_numbers = #tpu.dot_dimension_numbers<[1], [0], [0], [1], [0, 0, 1, 1], [], []>} : vector<16x8xbf16>, vector<8x64xbf16>, vector<16x64xf32> -> vector<16x64xf32>
    %30 = arith.addf %24, %29 : vector<16x64xf32>
    %c0_42 = arith.constant 0 : index
    %c0_43 = arith.constant 0 : index
    %c1_44 = arith.constant 1 : index
    %c0_45 = arith.constant 0 : index
    %31 = vector.load %arg3[%c0_42, %c0_43, %c1_44, %c0_45] : memref<1x1x17x8xbf16, #tpu.memory_space<vmem>>, vector<1x1x16x8xbf16>
    %32 = vector.shape_cast %31 : vector<1x1x16x8xbf16> to vector<16x8xbf16>
    %c1_46 = arith.constant 1 : index
    %c2_47 = arith.constant 2 : index
    %c0_48 = arith.constant 0 : index
    %c0_49 = arith.constant 0 : index
    %33 = vector.load %arg8[%c1_46, %c2_47, %c0_48, %c0_49] : memref<3x3x8x64xbf16, #tpu.memory_space<vmem>>, vector<1x1x8x64xbf16>
    %34 = vector.shape_cast %33 : vector<1x1x8x64xbf16> to vector<8x64xbf16>
    %cst_50 = arith.constant dense<0.000000e+00> : vector<16x64xf32>
    %35 = tpu.matmul %32, %34, %cst_50 {dimension_numbers = #tpu.dot_dimension_numbers<[1], [0], [0], [1], [0, 0, 1, 1], [], []>} : vector<16x8xbf16>, vector<8x64xbf16>, vector<16x64xf32> -> vector<16x64xf32>
    %36 = arith.addf %30, %35 : vector<16x64xf32>
    %c0_51 = arith.constant 0 : index
    %c0_52 = arith.constant 0 : index
    %c0_53 = arith.constant 0 : index
    %c0_54 = arith.constant 0 : index
    %37 = vector.load %arg4[%c0_51, %c0_52, %c0_53, %c0_54] : memref<1x1x17x8xbf16, #tpu.memory_space<vmem>>, vector<1x1x16x8xbf16>
    %38 = vector.shape_cast %37 : vector<1x1x16x8xbf16> to vector<16x8xbf16>
    %c2_55 = arith.constant 2 : index
    %c0_56 = arith.constant 0 : index
    %c0_57 = arith.constant 0 : index
    %c0_58 = arith.constant 0 : index
    %39 = vector.load %arg8[%c2_55, %c0_56, %c0_57, %c0_58] : memref<3x3x8x64xbf16, #tpu.memory_space<vmem>>, vector<1x1x8x64xbf16>
    %40 = vector.shape_cast %39 : vector<1x1x8x64xbf16> to vector<8x64xbf16>
    %cst_59 = arith.constant dense<0.000000e+00> : vector<16x64xf32>
    %41 = tpu.matmul %38, %40, %cst_59 {dimension_numbers = #tpu.dot_dimension_numbers<[1], [0], [0], [1], [0, 0, 1, 1], [], []>} : vector<16x8xbf16>, vector<8x64xbf16>, vector<16x64xf32> -> vector<16x64xf32>
    %42 = arith.addf %36, %41 : vector<16x64xf32>
    %c0_60 = arith.constant 0 : index
    %c0_61 = arith.constant 0 : index
    %c0_62 = arith.constant 0 : index
    %c0_63 = arith.constant 0 : index
    %43 = vector.load %arg7[%c0_60, %c0_61, %c0_62, %c0_63] : memref<1x1x17x8xbf16, #tpu.memory_space<vmem>>, vector<1x1x16x8xbf16>
    %44 = vector.shape_cast %43 : vector<1x1x16x8xbf16> to vector<16x8xbf16>
    %c2_64 = arith.constant 2 : index
    %c1_65 = arith.constant 1 : index
    %c0_66 = arith.constant 0 : index
    %c0_67 = arith.constant 0 : index
    %45 = vector.load %arg8[%c2_64, %c1_65, %c0_66, %c0_67] : memref<3x3x8x64xbf16, #tpu.memory_space<vmem>>, vector<1x1x8x64xbf16>
    %46 = vector.shape_cast %45 : vector<1x1x8x64xbf16> to vector<8x64xbf16>
    %cst_68 = arith.constant dense<0.000000e+00> : vector<16x64xf32>
    %47 = tpu.matmul %44, %46, %cst_68 {dimension_numbers = #tpu.dot_dimension_numbers<[1], [0], [0], [1], [0, 0, 1, 1], [], []>} : vector<16x8xbf16>, vector<8x64xbf16>, vector<16x64xf32> -> vector<16x64xf32>
    %48 = arith.addf %42, %47 : vector<16x64xf32>
    %c0_69 = arith.constant 0 : index
    %c0_70 = arith.constant 0 : index
    %c1_71 = arith.constant 1 : index
    %c0_72 = arith.constant 0 : index
    %49 = vector.load %arg4[%c0_69, %c0_70, %c1_71, %c0_72] : memref<1x1x17x8xbf16, #tpu.memory_space<vmem>>, vector<1x1x16x8xbf16>
    %50 = vector.shape_cast %49 : vector<1x1x16x8xbf16> to vector<16x8xbf16>
    %c2_73 = arith.constant 2 : index
    %c2_74 = arith.constant 2 : index
    %c0_75 = arith.constant 0 : index
    %c0_76 = arith.constant 0 : index
    %51 = vector.load %arg8[%c2_73, %c2_74, %c0_75, %c0_76] : memref<3x3x8x64xbf16, #tpu.memory_space<vmem>>, vector<1x1x8x64xbf16>
    %52 = vector.shape_cast %51 : vector<1x1x8x64xbf16> to vector<8x64xbf16>
    %cst_77 = arith.constant dense<0.000000e+00> : vector<16x64xf32>
    %53 = tpu.matmul %50, %52, %cst_77 {dimension_numbers = #tpu.dot_dimension_numbers<[1], [0], [0], [1], [0, 0, 1, 1], [], []>} : vector<16x8xbf16>, vector<8x64xbf16>, vector<16x64xf32> -> vector<16x64xf32>
    %54 = arith.addf %48, %53 : vector<16x64xf32>
    %c0_78 = arith.constant 0 : index
    %c0_79 = arith.constant 0 : index
    %55 = vector.load %arg9[%c0_78, %c0_79] : memref<1x64xf32, #tpu.memory_space<vmem>>, vector<1x64xf32>
    %56 = vector.broadcast %55 : vector<1x64xf32> to vector<16x64xf32>
    %57 = arith.addf %54, %56 : vector<16x64xf32>
    %cst_80 = arith.constant 0.000000e+00 : f32
    %58 = vector.broadcast %cst_80 : f32 to vector<16x64xf32>
    %59 = arith.maximumf %57, %58 : vector<16x64xf32>
    %60 = arith.truncf %59 : vector<16x64xf32> to vector<16x64xbf16>
    %c0_81 = arith.constant 0 : index
    %c0_82 = arith.constant 0 : index
    %c0_83 = arith.constant 0 : index
    %c0_84 = arith.constant 0 : index
    %61 = vector.load %arg10[%c0_81, %c0_82, %c0_83, %c0_84] : memref<1x1x16x64xbf16, #tpu.memory_space<vmem>>, vector<1x1x16x64xbf16>
    %62 = vector.shape_cast %61 : vector<1x1x16x64xbf16> to vector<16x64xbf16>
    %63 = vector.shape_cast %60 : vector<16x64xbf16> to vector<1x1x16x64xbf16>
    tpu.vector_store %arg10[%c0_81, %c0_82, %c0_83, %c0_84], %63 {strides = array<i32>} : memref<1x1x16x64xbf16, #tpu.memory_space<vmem>>, vector<1x1x16x64xbf16>,
    return
  }
  func.func @transform_0(%arg0: i32, %arg1: i32) -> (i32, i32, i32, i32) {
    %c2_i32 = arith.constant 2 : i32
    %0 = arith.muli %arg1, %c2_i32 : i32
    %c0_i32 = arith.constant 0 : i32
    %1 = arith.addi %0, %c0_i32 : i32
    %c0_i32_0 = arith.constant 0 : i32
    %c0_i32_1 = arith.constant 0 : i32
    %c0_i32_2 = arith.constant 0 : i32
    return %arg0, %1, %c0_i32_0, %c0_i32_1 : i32, i32, i32, i32
  }
  func.func @transform_1(%arg0: i32, %arg1: i32) -> (i32, i32, i32, i32) {
    %c2_i32 = arith.constant 2 : i32
    %0 = arith.muli %arg1, %c2_i32 : i32
    %c1_i32 = arith.constant 1 : i32
    %1 = arith.addi %0, %c1_i32 : i32
    %c0_i32 = arith.constant 0 : i32
    %c0_i32_0 = arith.constant 0 : i32
    %c0_i32_1 = arith.constant 0 : i32
    return %arg0, %1, %c0_i32, %c0_i32_0 : i32, i32, i32, i32
  }
  func.func @transform_2(%arg0: i32, %arg1: i32) -> (i32, i32, i32, i32) {
    %c2_i32 = arith.constant 2 : i32
    %0 = arith.muli %arg1, %c2_i32 : i32
    %c2_i32_0 = arith.constant 2 : i32
    %1 = arith.addi %0, %c2_i32_0 : i32
    %c0_i32 = arith.constant 0 : i32
    %c0_i32_1 = arith.constant 0 : i32
    %c0_i32_2 = arith.constant 0 : i32
    return %arg0, %1, %c0_i32, %c0_i32_1 : i32, i32, i32, i32
  }
  func.func @transform_3(%arg0: i32, %arg1: i32) -> (i32, i32, i32, i32) {
    %c2_i32 = arith.constant 2 : i32
    %0 = arith.muli %arg1, %c2_i32 : i32
    %c0_i32 = arith.constant 0 : i32
    %1 = arith.addi %0, %c0_i32 : i32
    %c0_i32_0 = arith.constant 0 : i32
    %c0_i32_1 = arith.constant 0 : i32
    %c0_i32_2 = arith.constant 0 : i32
    return %arg0, %1, %c0_i32_0, %c0_i32_1 : i32, i32, i32, i32
  }
  func.func @transform_4(%arg0: i32, %arg1: i32) -> (i32, i32, i32, i32) {
    %c2_i32 = arith.constant 2 : i32
    %0 = arith.muli %arg1, %c2_i32 : i32
    %c1_i32 = arith.constant 1 : i32
    %1 = arith.addi %0, %c1_i32 : i32
    %c0_i32 = arith.constant 0 : i32
    %c0_i32_0 = arith.constant 0 : i32
    %c0_i32_1 = arith.constant 0 : i32
    return %arg0, %1, %c0_i32, %c0_i32_0 : i32, i32, i32, i32
  }
  func.func @transform_5(%arg0: i32, %arg1: i32) -> (i32, i32, i32, i32) {
    %c2_i32 = arith.constant 2 : i32
    %0 = arith.muli %arg1, %c2_i32 : i32
    %c2_i32_0 = arith.constant 2 : i32
    %1 = arith.addi %0, %c2_i32_0 : i32
    %c0_i32 = arith.constant 0 : i32
    %c0_i32_1 = arith.constant 0 : i32
    %c0_i32_2 = arith.constant 0 : i32
    return %arg0, %1, %c0_i32, %c0_i32_1 : i32, i32, i32, i32
  }
  func.func @transform_6(%arg0: i32, %arg1: i32) -> (i32, i32, i32, i32) {
    %c0_i32 = arith.constant 0 : i32
    %c0_i32_0 = arith.constant 0 : i32
    %c0_i32_1 = arith.constant 0 : i32
    %c0_i32_2 = arith.constant 0 : i32
    %c0_i32_3 = arith.constant 0 : i32
    return %c0_i32, %c0_i32_0, %c0_i32_1, %c0_i32_2 : i32, i32, i32, i32
  }
  func.func @transform_7(%arg0: i32, %arg1: i32) -> (i32, i32) {
    %c0_i32 = arith.constant 0 : i32
    %c0_i32_0 = arith.constant 0 : i32
    %c0_i32_1 = arith.constant 0 : i32
    return %c0_i32, %c0_i32_0 : i32, i32
  }
  func.func @transform_8(%arg0: i32, %arg1: i32) -> (i32, i32, i32, i32) {
    %c0_i32 = arith.constant 0 : i32
    %c0_i32_0 = arith.constant 0 : i32
    %c0_i32_1 = arith.constant 0 : i32
    return %arg0, %arg1, %c0_i32, %c0_i32_0 : i32, i32, i32, i32
  }
}

</mosaic_0001>

<bundles_post_ra>
// kernel: tpu_custom_call.1
= control target key start
LH: loop header
LB: loop body
LE: loop exit
PB: predicated region body
PF: predicated region fallthrough
CT: control target
= control target key end

     0   :  { %13 = vsyncpa [#allocation3], 0  ;;  %s2008_s0 = inlined_call_operand.vmem [shape: bf16[2,34,17,8], index: 0, kind: input, shape index: {}]   ;;  %s2009_s1 = inlined_call_operand.vmem [shape: bf16[2,34,17,8], index: 1, kind: input, shape index: {}]   ;;  %s2010_s2 = inlined_call_operand.vmem [shape: bf16[2,34,17,8], index: 2, kind: input, shape index: {}]   ;;  %s2011_s3 = inlined_call_operand.vmem [shape: bf16[2,34,17,8], index: 3, kind: input, shape index: {}]   ;;  %s2012_s4 = inlined_call_operand.vmem [shape: bf16[2,34,17,8], index: 4, kind: input, shape index: {}]   ;;  %s2013_s5 = inlined_call_operand.vmem [shape: bf16[2,34,17,8], index: 5, kind: input, shape index: {}]   ;;  %s2014_s6 = inlined_call_operand.vmem [shape: bf16[3,3,8,64], index: 6, kind: input, shape index: {}]   ;;  %s2015_s7 = inlined_call_operand.vmem [shape: f32[1,64], index: 7, kind: input, shape index: {}]   ;;  %s2016_s8 = inlined_call_operand.hbm [shape: bf16[2,16,16,64], index: 8, kind: output, shape index: {}]  }
   0x1   :  { %15 = vsyncpa [#allocation3 + $0x1], 0  ;;  %s1748_s27 = smov 0   ;;  %s1750_s28 = smov 0  }
   0x2   :  { %s1752_s29 = smov 0   ;;  %s1754_s30 = smov 0  }
   0x3   :  { %s1756_s9 = smov 0   ;;  %s1758_s10 = smov 0  }
   0x4   :  { %s1760_s11 = smov 0   ;;  %s1762_s12 = smov 0  }
   0x5 LB: > { %2024 = sst [smem:[#allocation5_spill]] %s1668_s27  ;;  %s1369_s13 = sadd.s32 4294967295, %s1696_s12   ;;  %s1696_s12 = sphi %s1762_s12, %s21_s12   ;;  %s1692_s11 = sphi %s1760_s11, %s2042_s11   ;;  %s1688_s10 = sphi %s1758_s10, %s2041_s10   ;;  %s1684_s9 = sphi %s1756_s9, %s2040_s9   ;;  %s1680_s30 = sphi %s1754_s30, %s2039_s30   ;;  %s1676_s29 = sphi %s1752_s29, %s2038_s29   ;;  %s1672_s28 = sphi %s1750_s28, %s2044_s28   ;;  %s1668_s27 = sphi %s1748_s27, %s2043_s27  }
   0x6   : > { %2025 = sst [smem:[#allocation6_spill]] %s1676_s29  ;;  %s1370_s14 = sadd.s32 4294967294, %s1696_s12  }
   0x7   : > { %2026 = sst [smem:[#allocation7_spill]] %s1688_s10  ;;  %s30_s15 = sadd.s32 1, %s1688_s10 }
   0x8   : > { %2027 = sst [smem:[#allocation8_spill]] %s1692_s11  ;;  %p31_p0 = scmp.ge.s32.totalorder %s30_s15, 16 }
   0x9   : > { %s33_s16 = sadd.s32 1, %s1692_s11  ;;  %p282_p1 = scmp.ne.s32.totalorder %s1676_s29, %s1672_s28 }
   0xa   : > { %p283_p2 = scmp.eq.s32.totalorder %s1369_s13, 31  ;;  %s2046_s15 = smov (%p31_p0, %s30_s15), 0 }
   0xb   : > { %2028 = sst [smem:[#allocation9_spill]] %s2046_s15  ;;  %s2048_s16 = smov (!%p31_p0, %s33_s16), %s1692_s11 }
   0xc   : > { %s268_s17 = ssub.s32 %s1688_s10, %s2046_s15  ;;  %p1799_p3 = por %p283_p2, %p282_p1 }
   0xd   : > { %p35_p4 = scmp.ge.s32.totalorder %s2048_s16, 2  ;;  %p288_p5 = scmp.ne.s32.totalorder %s1672_s28, %s1668_s27 }
   0xe   : > { %p289_p6 = scmp.eq.s32.totalorder %s1370_s14, 31  ;;  %p1385_p7 = scmp.ge.s32.totalorder %s1696_s12, 1 }
   0xf   : > { %s2050_s16 = smov (%p35_p4, %s2048_s16), 0  ;;  %p405_p9 = scmp.lt.s32.totalorder %s1696_s12, 33 }
  0x10   : > { %2030 = sst [smem:[#allocation10_spill]] %s2050_s16  ;;  %p1808_p8 = por %p289_p6, %p288_p5 }
  0x11   : > { %s267_s20 = ssub.s32 %s1692_s11, %s2050_s16  ;;  %s272_s21 = sadd.s32 1, %s1676_s29 }
  0x12   : > { %s2031_s19 = scalar_select %p1808_p8, 1, 0 }
  0x13   : > { %s269_s22 = sor.u32 %s268_s17, %s267_s20  ;;  %p406_p10 = pnand %p1385_p7, %p405_p9 }
  0x14   : > { %2032 = sst [smem:[#allocation11_spill]] %s2031_s19  ;;  %p270_p11 = scmp.eq.s32.totalorder %s269_s22, 0  ;;  %v1399_v0 = vld [vmem:[%s2014_s6 + $0x4] sm:$0xf] (!%p406_p10)  ;;  %vm589_vm0 = vcmask (!%p406_p10), 1043456   ;;  %v1698_v2 = vmov (!%p406_p10), 0.0  }
  0x15   : > { %409 = sbr.rel (%p406_p10) target bundleno = 307 (0x133), region = 52  ;;  %v575_v1 = vld [vmem:[%s2014_s6] sm:$0xf] (!%p406_p10)  ;;  %1457 = vmatprep.subr.bf16.mxu0 (!%p406_p10), %v1698_v2  ;;  %v591_v3 = vsel (!%p406_p10), %vm589_vm0, %v1399_v0, 0  ;;  %1463 = vmatprep.subr.bf16.mxu1 (!%p406_p10), %v1698_v2  ;;  %s1830_s14 = sshll.u32 (!%p406_p10), %s1680_s30, 1  ;;  %vm1699_vm1 = vmmov (!%p406_p10), 0  }
  0x16   : > { %s1817_s23 = scalar_select %p270_p11, %s1676_s29, %s272_s21  }
  0x17   : > { %v643_v4 = vsel (!%p406_p10), %vm589_vm0, %v575_v1, 0  ;;  %p499_p12 = scmp.lt.s32.totalorder (!%p406_p10), %s1684_s9, 1  ;;  %1458 = vmatpush3.bf16.msra.mxu0 (!%p406_p10), %v591_v3  ;;  %p501_p13 = scmp.lt.s32.totalorder (!%p406_p10), %s1830_s14, 33  ;;  %1459 = vmatprep.mubr.msk.bf16.mxu0 (!%p406_p10), %vm1699_vm1, %v1698_v2  ;;  %v1404_v5 = vld [vmem:[%s2014_s6 + $0x8] sm:$0xf] (!%p406_p10)  ;;  %vm585_vm2 = vcmask (!%p406_p10), 64512  }
  0x18   : > { %2033 = sst [smem:[#allocation12_spill]] %s1817_s23  ;;  %1464 = vmatpush3.bf16.msra.mxu1 (!%p406_p10), %v643_v4  ;;  %s510_s17 = sadd.s32 (!%p406_p10), 1, %s1830_s14  ;;  %1465 = vmatprep.mubr.msk.bf16.mxu1 (!%p406_p10), %vm1699_vm1, %v1698_v2  ;;  %v1408_v6 = vld [vmem:[%s2014_s6 + $0xc] sm:$0xf] (!%p406_p10)  ;;  %v716_v7 = vsel (!%p406_p10), %vm589_vm0, %v1404_v5, 0  ;;  %vm1160_vm4 = vcmask (!%p406_p10), 519168  }
  0x19   : > { %1469 = vmatprep.subr.bf16.mxu0 (!%p406_p10), %v1698_v2  ;;  %1475 = vmatprep.subr.bf16.mxu1 (!%p406_p10), %v1698_v2  ;;  %p513_p0 = scmp.lt.s32.totalorder (!%p406_p10), %s510_s17, 33  ;;  %s523_s24 = sadd.s32 (!%p406_p10), 2, %s1830_s14  ;;  %vm699_vm3 = vsmask.f32 (!%p406_p10), 7424  ;;  %v774_v9 = vsel (!%p406_p10), %vm589_vm0, %v1408_v6, 0 }
  0x1a   : > { %p1850_p1 = scmp.lt.s32.totalorder (!%p406_p10), %s523_s24, 33  ;;  %v1411_v15 = vld [vmem:[%s2014_s6 + $0x10] sm:$0xf] (!%p406_p10)  ;;  %v1414_v16 = vld [vmem:[%s2014_s6 + $0x14] sm:$0xf] (!%p406_p10) }
  0x1b   : > { %v832_v26 = vsel (!%p406_p10), %vm589_vm0, %v1411_v15, 0  ;;  %v906_v27 = vsel (!%p406_p10), %vm589_vm0, %v1414_v16, 0  ;;  %v1418_v33 = vld [vmem:[%s2014_s6 + $0x18] sm:$0xf] (!%p406_p10)  ;;  %v1421_v34 = vld [vmem:[%s2014_s6 + $0x1c] sm:$0xf] (!%p406_p10) }
  0x1c   : > { %s500_s20 = scalar_select %p499_p12, %s1684_s9, 1  ;;  %v964_v38 = vsel %vm589_vm0, %v1418_v33, 0  ;;  %v1022_v39 = vsel %vm589_vm0, %v1421_v34, 0  ;;  %v1424_v42 = vld [vmem:[%s2014_s6 + $0x20] sm:$0xf] }
  0x1d   : > { %s502_s30 = scalar_select %p501_p13, %s1830_s14, 33  ;;  %v1096_v48 = vsel %vm589_vm0, %v1424_v42, 0 }
  0x1e   : > { %s1843_s21 = smul.u32 102, %s500_s20  ;;  %s2052_s17 = smov (!%p513_p0, %s510_s17), 33 }
  0x1f   : > { %s1511_s22 = smul.u32 3, %s502_s30  ;;  %s2054_s24 = smov (!%p1850_p1, %s523_s24), 33 }
  0x20   : > { %s1513_s10 = smul.u32 3, %s2052_s17 }
  0x21   : > { %s505_s13 = sadd.s32 %s1843_s21, %s1511_s22 }
  0x22   : > { %s1388_s20 = sshll.u32 %s505_s13, 2  ;;  %s517_s22 = sadd.s32 %s1513_s10, %s1843_s21 }
  0x23   : > { %s507_s29 = scalar_lea.vmem %s2008_s0, %s1388_s20  ;;  %s544_s25 = scalar_lea.vmem %s2011_s3, %s1388_s20 }
  0x24   : > { %v1590_v8 = vld [vmem:[%s544_s25] sm:$0xff]   ;;  %s1390_s11 = sshll.u32 %s517_s22, 2  ;;  %v1593_v12 = vld [vmem:[%s507_s29 + $0x8] ss:$0 sps:$4 sm:$0x11]   ;;  %s1514_s10 = smul.u32 3, %s2054_s24 }
  0x25   : > { %v1591_v10 = vld [vmem:[%s507_s29] sm:$0xff]   ;;  %1460 = vmatmul.mubr.msk.bf16.vlgmr.msra.gmra.mrb[0].mxu0 %vm585_vm2, %v1590_v8  ;;  %s519_s19 = scalar_lea.vmem %s2009_s1, %s1390_s11  ;;  %s1884_s20 = scalar_lea.vmem %s2012_s4, %s1390_s11  ;;  %v708_v17 = vshll.u32 %v1593_v12, 16 }
  0x26   : > { %v1592_v11 = vld [vmem:[%s507_s29] sm:$0xff]   ;;  %1466 = vmatmul.mubr.msk.bf16.vlgmr.msra.gmra.mrb[0].mxu1 %vm585_vm2, %v1591_v10  ;;  %1470 = vmatpush3.bf16.msra.mxu0 %v716_v7  ;;  %s530_s24 = sadd.s32 %s1514_s10, %s1843_s21  ;;  %v1597_v23 = vld [vmem:[%s519_s19 + $0x8] ss:$0 sps:$4 sm:$0x11]   ;;  %s495_s29 = sand.u32 1, %s1672_s28  }
  0x27   : > { %1476 = vmatpush3.bf16.msra.mxu1 %v774_v9  ;;  %1471 = vmatprep.mubr.msk.bf16.mxu0 %vm1699_vm1, %v1698_v2  ;;  %v701_v13 = vshrl.u32 %v1592_v11, 16  ;;  %v703_v14 = vshll.u32 %v1592_v11, 16  ;;  %v1594_v18 = vld [vmem:[%s519_s19] sm:$0xff]   ;;  %s1392_s30 = sshll.u32 %s530_s24, 2  ;;  %v710_v21 = vrot.slane %v708_v17, 1  ;;  %v898_v30 = vshll.u32 %v1597_v23, 16 }
  0x28   : > { %1481 = vmatprep.subr.bf16.mxu0 %v1698_v2  ;;  %1477 = vmatprep.mubr.msk.bf16.mxu1 %vm1699_vm1, %v1698_v2  ;;  %v1596_v20 = vld [vmem:[%s519_s19] sm:$0xff]   ;;  %s1894_s11 = scalar_lea.vmem %s2010_s2, %s1392_s30  ;;  %s1901_s15 = scalar_lea.vmem %s2013_s5, %s1392_s30 }
  0x29   : > { %v705_v19 = vrot.slane %v703_v14, 1  ;;  %1487 = vmatprep.subr.bf16.mxu1 %v1698_v2  ;;  %v891_v24 = vshrl.u32 %v1596_v20, 16  ;;  %v893_v25 = vshll.u32 %v1596_v20, 16  ;;  %v900_v32 = vrot.slane %v898_v30, 1  ;;  %v1595_v35 = vld [vmem:[%s1884_s20] sm:$0xff]   ;;  %s1386_s13 = sshll.u32 %s495_s29, 3 }
  0x2a   : > { %v1600_v37 = vld [vmem:[%s1894_s11] sm:$0xff]   ;;  %v1601_v40 = vld [vmem:[%s1894_s11 + $0x8] ss:$0 sps:$4 sm:$0x11]   ;;  %s1433_s20 = sshll.u32 %s1684_s9, 5  ;;  %s1700_s10 = smov [#allocation2]  }
  0x2b   : > { %v706_v22 = vor.u32 %v705_v19, %v701_v13  ;;  %v895_v29 = vrot.slane %v893_v25, 1  ;;  %v1083_v41 = vshll.u32 %v1600_v37, 16  ;;  %v1598_v43 = vld [vmem:[%s1894_s11] sm:$0xff]   ;;  %v1081_v45 = vshrl.u32 %v1600_v37, 16  ;;  %s1176_s25 = sadd.s32 %s1433_s20, %s1830_s14  ;;  %s497_s11 = scalar_lea.vmem [#allocation2], %s1386_s13 }
  0x2c   : > { %v1599_v44 = vld [vmem:[%s1901_s15] sm:$0xff]   ;;  %v1088_v47 = vshll.u32 %v1601_v40, 16  ;;  %s1434_s22 = sshll.u32 %s1176_s25, 6  ;;  %s1179_s21 = sshll.u32 %s497_s11, 4  ;;  %s1954_s21 = int_to_ptr.vmem [resolvable:$true] %s1179_s21 }
  0x2d   : > { %v711_v28 = vsel %vm699_vm3, %v706_v22, %v710_v21  ;;  %v896_v31 = vor.u32 %v895_v29, %v891_v24  ;;  %v1085_v46 = vrot.slane %v1083_v41, 1  ;;  %s1952_s15 = scalar_lea.hbm %s2016_s8, %s1434_s22  ;;  %s1956_s14 = scalar_lea.sflag [#allocation3], %s495_s29 }
  0x2e   : > { %1472 = vmatmul.mubr.msk.bf16.vlgmr.msra.gmra.mrb[4].mxu0 %vm585_vm2, %v711_v28  ;;  %1478 = vmatmul.mubr.msk.bf16.vlgmr.msra.gmra.mrb[4].mxu1 %vm585_vm2, %v1594_v18  ;;  %v1090_v50 = vrot.slane %v1088_v47, 1  ;;  %s1602_s19 = scalar_lea.vmem %s1954_s21, 128  ;;  %s1606_s16 = sshll.u32 %s1700_s10, 4  ;;  %s1607_s16 = int_to_ptr.vmem [resolvable:$false] %s1606_s16 }
  0x2f   : > { %1482 = vmatpush3.bf16.msra.mxu0 %v832_v26  ;;  %1488 = vmatpush3.bf16.msra.mxu1 %v906_v27  ;;  %v901_v36 = vsel %vm699_vm3, %v896_v31, %v900_v32  ;;  %v1086_v49 = vor.u32 %v1085_v46, %v1081_v45  ;;  %p1603_p2 = scmp.ne.s32.totalorder %s1954_s21, %s1602_s19  ;;  %s1608_s23 = scalar_lea.vmem %s1607_s16, 256 }
  0x30   : > { %1483 = vmatprep.mubr.msk.bf16.mxu0 %vm1699_vm1, %v1698_v2  ;;  %1493 = vmatprep.subr.bf16.mxu0 %v1698_v2  ;;  %p1609_p6 = scmp.lt.s32.totalorder %s1954_s21, %s1607_s16  ;;  %p1610_p7 = scmp.lt.s32.totalorder %s1608_s23, %s1602_s19 }
  0x31   : > { %1489 = vmatprep.mubr.msk.bf16.mxu1 %vm1699_vm1, %v1698_v2  ;;  %1499 = vmatprep.subr.bf16.mxu1 %v1698_v2  ;;  %v1091_v51 = vsel %vm699_vm3, %v1086_v49, %v1090_v50  ;;  %p1604_p4 = pnand %p1603_p2, %p1799_p3 }
  0x32   : > { %p1611_p9 = por %p1610_p7, %p1609_p6 }
  0x33   : > { %p1605_p5 = pneg %p1604_p4 }
  0x35   : > { %p1612_p10 = pnand %p1611_p9, %p1605_p5 }
  0x36   : > { %1484 = vmatmul.mubr.msk.bf16.vlgmr.msra.gmra.mrb[8].mxu0 %vm585_vm2, %v1595_v35  ;;  %1490 = vmatmul.mubr.msk.bf16.vlgmr.msra.gmra.mrb[8].mxu1 %vm585_vm2, %v901_v36  ;;  %v1428_v35 = vld [vmem:[%s2015_s7] ss:$0 sm:$0xff] }
  0x37   : > { %1494 = vmatpush3.bf16.msra.mxu0 %v964_v38  ;;  %1500 = vmatpush3.bf16.msra.mxu1 %v1022_v39 }
  0x38   : > { %1495 = vmatprep.mubr.msk.bf16.mxu0 %vm1699_vm1, %v1698_v2  ;;  %1505 = vmatprep.subr.bf16.mxu0 %v1698_v2 }
  0x39   : > { %1501 = vmatprep.mubr.msk.bf16.mxu1 %vm1699_vm1, %v1698_v2 }
  0x3e   : > { %1496 = vmatmul.mubr.msk.bf16.vlgmr.msra.gmra.mrb[12].mxu0 %vm585_vm2, %v1598_v43  ;;  %1502 = vmatmul.mubr.msk.bf16.vlgmr.msra.gmra.mrb[12].mxu1 %vm585_vm2, %v1599_v44 }
  0x3f   : > { %1506 = vmatpush3.bf16.msra.mxu0 %v1096_v48  ;;  %1507 = vmatprep.mubr.msk.bf16.mxu0 %vm1699_vm1, %v1698_v2 }
  0x46   : > { %1508 = vmatmul.mubr.msk.bf16.vlgmr.msra.gmra.mrb[16].mxu0 %vm585_vm2, %v1091_v51 }
  0xf8   : > { %v627_v52 = vpop.f32.mrb[0].mxu0 }
  0xf9   : > { %v679_v53 = vpop.f32.mrb[0].mxu1  ;;  %v1461_v54 = vpop.f32.mrb[1].mxu0 }
  0xfa   : > { %v680_v55 = vadd.f32 %v679_v53, %v627_v52  ;;  %v1467_v56 = vpop.f32.mrb[1].mxu1  ;;  %v630_v57 = vpop.f32.mrb[2].mxu0 }
  0xfb   : > { %v682_v58 = vpop.f32.mrb[2].mxu1  ;;  %v1462_v59 = vpop.f32.mrb[3].mxu0 }
  0xfc   : > { %v683_v60 = vadd.f32 %v682_v58, %v630_v57  ;;  %v1468_v61 = vpop.f32.mrb[3].mxu1 }
 0x101   : > { %v752_v62 = vpop.f32.mrb[4].mxu0  ;;  %v810_v63 = vpop.f32.mrb[4].mxu1 }
 0x102   : > { %v759_v0 = vadd.f32 %v752_v62, %v680_v55  ;;  %v1473_v1 = vpop.f32.mrb[5].mxu0  ;;  %v1479_v2 = vpop.f32.mrb[5].mxu1 }
 0x103   : > { %v755_v3 = vpop.f32.mrb[6].mxu0  ;;  %v813_v4 = vpop.f32.mrb[6].mxu1 }
 0x104   : > { %v760_v5 = vadd.f32 %v755_v3, %v683_v60  ;;  %v817_v6 = vadd.f32 %v810_v63, %v759_v0  ;;  %v1474_v7 = vpop.f32.mrb[7].mxu0  ;;  %v1480_v8 = vpop.f32.mrb[7].mxu1 }
 0x106   : > { %v818_v9 = vadd.f32 %v813_v4, %v760_v5 }
 0x109   : > { %v868_v10 = vpop.f32.mrb[8].mxu0  ;;  %v942_v11 = vpop.f32.mrb[8].mxu1 }
 0x10a   : > { %v875_v12 = vadd.f32 %v868_v10, %v817_v6  ;;  %v1485_v13 = vpop.f32.mrb[9].mxu0  ;;  %v1491_v14 = vpop.f32.mrb[9].mxu1 }
 0x10b   : > { %v871_v15 = vpop.f32.mrb[10].mxu0  ;;  %v945_v16 = vpop.f32.mrb[10].mxu1 }
 0x10c   : > { %v876_v17 = vadd.f32 %v871_v15, %v818_v9  ;;  %v949_v18 = vadd.f32 %v942_v11, %v875_v12  ;;  %v1486_v19 = vpop.f32.mrb[11].mxu0  ;;  %v1492_v20 = vpop.f32.mrb[11].mxu1 }
 0x10e   : > { %v950_v21 = vadd.f32 %v945_v16, %v876_v17 }
 0x111   : > { %v1000_v22 = vpop.f32.mrb[12].mxu0  ;;  %v1058_v23 = vpop.f32.mrb[12].mxu1 }
 0x112   : > { %v1007_v24 = vadd.f32 %v1000_v22, %v949_v18  ;;  %v1497_v25 = vpop.f32.mrb[13].mxu0  ;;  %v1503_v26 = vpop.f32.mrb[13].mxu1 }
 0x113   : > { %v1003_v27 = vpop.f32.mrb[14].mxu0  ;;  %v1061_v28 = vpop.f32.mrb[14].mxu1 }
 0x114   : > { %v1008_v29 = vadd.f32 %v1003_v27, %v950_v21  ;;  %v1065_v30 = vadd.f32 %v1058_v23, %v1007_v24  ;;  %v1498_v31 = vpop.f32.mrb[15].mxu0  ;;  %v1504_v32 = vpop.f32.mrb[15].mxu1 }
 0x116   : > { %v1066_v33 = vadd.f32 %v1061_v28, %v1008_v29 }
 0x119   : > { %v1132_v34 = vpop.f32.mrb[16].mxu0 }
 0x11a   : > { %v1139_v36 = vadd.f32 %v1132_v34, %v1065_v30  ;;  %v1509_v37 = vpop.f32.mrb[17].mxu0 }
 0x11b   : > { %v1135_v38 = vpop.f32.mrb[18].mxu0 }
 0x11c   : > { %v1148_v39 = vadd.f32 %v1428_v35, %v1139_v36  ;;  %v1140_v40 = vadd.f32 %v1135_v38, %v1066_v33  ;;  %v1510_v41 = vpop.f32.mrb[19].mxu0 }
 0x11e   : > { %v1150_v42 = vmax.f32 %v1148_v39, 0.0  ;;  %v1149_v43 = vadd.f32 %v1428_v35, %v1140_v40 }
 0x120   : > { %v1437_v44 = vpack.c.bf16 %v1150_v42, %v1150_v42  ;;  %v1151_v45 = vmax.f32 %v1149_v43, 0.0 }
 0x122   : > { %1161 = vst.msk [vmem:[%s497_s11] sm:$0xf] %vm1160_vm4, %v1437_v44  ;;  %v1438_v46 = vpack.c.bf16 %v1151_v45, %v1151_v45 }
 0x124   : > { %1162 = vst.msk [vmem:[%s497_s11 + $0x4] sm:$0xf] %vm1160_vm4, %v1438_v46 }
 0x125   : > { %1615 = shalt.err (!%p1612_p10)
}
 0x126   : > { %s1616_s17 = scalar_lea.hbm %s1952_s15, 128  ;;  %s1620_s13 = scalar_lea.hbm %s2016_s8, 4096 }
 0x127   : > { %p1617_p11 = scmp.ne.s32.totalorder %s1952_s15, %s1616_s17  ;;  %p1621_p0 = scmp.lt.u32.totalorder %s1952_s15, %s2016_s8 }
 0x128   : > { %p1622_p1 = scmp.lt.u32.totalorder %s1620_s13, %s1616_s17  ;;  %p1624_p4 = scmp.lt.u32.totalorder %s1616_s17, %s1952_s15 }
 0x129   : > { %p1618_p12 = pnand %p1617_p11, %p1799_p3 }
 0x12a   : > { %p1623_p2 = por %p1622_p1, %p1621_p0 }
 0x12b   : > { %p1619_p13 = pneg %p1618_p12 }
 0x12c   : > { %p1625_p5 = por %p1624_p4, %p1623_p2 }
 0x12e   : > { %p1626_p6 = pnand %p1625_p5, %p1619_p13 }
 0x130   : > { %1629 = shalt.err (!%p1626_p6)
}
 0x131   : > { %s1701_s30 = smov 64   ;;  %s1702_s25 = smov 4  }
 0x132   : > { %1515 = dma.vmem_to_hbm [thread:$0]  (%p1799_p3), %s1954_s21, 128, %s1952_s15, %s1956_s14, %s1701_s30, %s1701_s30, %s1702_s25  }
 0x133 PF: > { %s2035_s22 = sld [smem:[#allocation5_spill]]  ;;  %p1521_p7 = scmp.ge.s32.totalorder %s1696_s12, 2 }
 0x135   : > { %p1518_p9 = pnand %p1521_p7, %p1808_p8 }
 0x139   : > { %s1194_s9 = sand.u32 1, %s2035_s22  }
 0x13a   : > { %s1195_s27 = scalar_lea.sflag [#allocation3], %s1194_s9 }
 0x13b   : > { %1663 = dma.done.wait (!%p1518_p9), %s1195_s27, 128  }
 0x13c   : > { %1665 = vsyncadd (!%p1518_p9), %s1195_s27, 4294967168  ;;  %s21_s12 = sadd.s32 1, %s1696_s12   ;;  %s2037_s19 = sld [smem:[#allocation6_spill]] }
 0x13d   : > { %p18_p10 = scmp.ge.s32.totalorder %s21_s12, 34   ;;  %s2038_s29 = sld [smem:[#allocation12_spill]] }
 0x13e   : > { %s2039_s30 = sld [smem:[#allocation7_spill]]  ;;  %s2040_s9 = sld [smem:[#allocation8_spill]] }
 0x13f   : > { %s2041_s10 = sld [smem:[#allocation9_spill]]  ;;  %s2042_s11 = sld [smem:[#allocation10_spill]] }
 0x140   : > { %s2043_s27 = smov %s1672_s28  ;;  %20 = sbr.rel (!%p18_p10) target bundleno = 5 (0x5), region = 110 }
 0x142   : > { %s2044_s28 = smov %s2037_s19 }
 0x147   :  { %1200 = vsyncpa [#allocation3], 1 }
 0x148   :  { %1202 = vsyncpa [#allocation3 + $0x1], 1 }

</bundles_post_ra>
